<compile_context>
chip_gen: v6e
topology: v6e:2x2x1
jax: 0.10.0
libtpu: 0.0.40
codegen_flags: <defaults>
</compile_context>

<pallas_src>
import jax
import jax.numpy as jnp
from jax.experimental import pallas as pl
from jax.experimental.pallas import tpu as pltpu


# ----------------------------------------------------------------------------
# Kernels
# ----------------------------------------------------------------------------
def _project_qkv(xi, xo, w_ref, b_ref):
    """Conv1d(k=1) projections shared by both kernels.

    xi: (bn, tq, C) bf16, xo: (bn, tk, C) bf16
    w_ref: (3, C, D) bf16  stacked [Wq*scale, Wk, Wv]
    b_ref: (3, 1, D) f32   stacked [bq*scale, bk, bv]
    Returns bf16 (q, k, v) with shapes (bn, tq, D), (bn, tk, D), (bn, tk, D).
    """
    bn, _, C = xi.shape
    D = w_ref.shape[-1]
    wq = jnp.broadcast_to(w_ref[0], (bn, C, D))
    wk = jnp.broadcast_to(w_ref[1], (bn, C, D))
    wv = jnp.broadcast_to(w_ref[2], (bn, C, D))
    q = jnp.einsum('bqc,bcd->bqd', xi, wq,
                   preferred_element_type=jnp.float32) + b_ref[0]
    k = jnp.einsum('bkc,bcd->bkd', xo, wk,
                   preferred_element_type=jnp.float32) + b_ref[1]
    v = jnp.einsum('bkc,bcd->bkd', xo, wv,
                   preferred_element_type=jnp.float32) + b_ref[2]
    return (q.astype(jnp.bfloat16), k.astype(jnp.bfloat16),
            v.astype(jnp.bfloat16))


def _attn_single_kernel(xi_ref, xo_ref, w_ref, b_ref, out_ref):
    """Whole K/V length in one tile: plain (stable) softmax, no scratch."""
    qb, kb, vb = _project_qkv(xi_ref[...], xo_ref[...], w_ref, b_ref)
    # scale already folded into the Q projection
    s = jnp.einsum('bqd,bkd->bqk', qb, kb,
                   preferred_element_type=jnp.float32)          # (bn, tq, lk) f32
    m = jnp.max(s, axis=-1, keepdims=True)
    p = jnp.exp(s - m)
    inv = pl.reciprocal(jnp.sum(p, axis=-1, keepdims=True), approx=True)  # EUP
    out = jnp.einsum('bqk,bkd->bqd', (p * inv).astype(jnp.bfloat16), vb,
                     preferred_element_type=jnp.float32)
    out_ref[...] = out.astype(out_ref.dtype)


def _attn_flash_kernel(xi_ref, xo_ref, w_ref, b_ref, out_ref, m_sc, l_sc, acc_sc):
    """Flash / online-softmax path for long K/V sequences."""
    kv_i = pl.program_id(2)

    @pl.when(kv_i == 0)
    def _init():
        m_sc[...] = jnp.full(m_sc.shape, -jnp.inf, dtype=m_sc.dtype)
        l_sc[...] = jnp.zeros(l_sc.shape, dtype=l_sc.dtype)
        acc_sc[...] = jnp.zeros(acc_sc.shape, dtype=acc_sc.dtype)

    qb, kb, vb = _project_qkv(xi_ref[...], xo_ref[...], w_ref, b_ref)

    s = jnp.einsum('bqd,bkd->bqk', qb, kb,
                   preferred_element_type=jnp.float32)          # (bn, tq, tk) f32

    m_prev = m_sc[...]
    m_new = jnp.maximum(m_prev, jnp.max(s, axis=-1, keepdims=True))
    alpha = jnp.exp(m_prev - m_new)
    p = jnp.exp(s - m_new)
    l_sc[...] = alpha * l_sc[...] + jnp.sum(p, axis=-1, keepdims=True)
    acc_sc[...] = alpha * acc_sc[...] + jnp.einsum(
        'bqk,bkd->bqd', p.astype(jnp.bfloat16), vb,
        preferred_element_type=jnp.float32)
    m_sc[...] = m_new

    @pl.when(kv_i == pl.num_programs(2) - 1)
    def _finalize():
        inv_l = pl.reciprocal(l_sc[...], approx=True)           # EUP, not VALU divide
        out_ref[...] = (acc_sc[...] * inv_l).astype(out_ref.dtype)


# ----------------------------------------------------------------------------
# Wrapper
# ----------------------------------------------------------------------------
def _pick_tile(n, cap):
    """Largest divisor of n that is <= cap and a multiple of 8 (else n)."""
    if n <= cap:
        return n
    for t in range(min(n, cap), 0, -1):
        if n % t == 0 and t % 8 == 0:
            return t
    return n  # fall back to the full (unblocked) dimension


def _pick_batch(n, cap):
    """Largest divisor of n that is <= cap (batch dim has no (8,128) rule)."""
    if n <= cap:
        return n
    for t in range(cap, 0, -1):
        if n % t == 0:
            return t
    return 1


def attention_pallas(x_inner, x_outer, wq, bq, wk, bk, wv, bv, *,
                     n_factor=None, tq_cap=256, tk_cap=512,
                     single_pass_lk_cap=1024):
    """x_inner: (N, C, Lq), x_outer: (N, C, Lk)  (PyTorch NCL layout).
    wq/wk/wv: (D, C)  (Conv1d k=1 weight squeezed), bq/bk/bv: (D,).
    Returns (N, Lq, D) float32, matching the PyTorch module output."""
    N, C, Lq = x_inner.shape
    _, _, Lk = x_outer.shape
    D = wq.shape[0]
    if n_factor is None:
        n_factor = D  # module uses out_channels as the softmax scale factor

    # NCL -> NLC transpose fused with the bf16 downcast (one XLA pass over HBM).
    xi = jnp.transpose(x_inner, (0, 2, 1)).astype(jnp.bfloat16)   # (N, Lq, C)
    xo = jnp.transpose(x_outer, (0, 2, 1)).astype(jnp.bfloat16)   # (N, Lk, C)

    # Fold the softmax scale 1/sqrt(n_factor) into the Q projection; stack
    # weights/biases so only two constant operands are pipelined.
    scale = 1.0 / (float(n_factor) ** 0.5)
    w_stack = jnp.stack([wq.T * scale, wk.T, wv.T],
                        axis=0).astype(jnp.bfloat16)                    # (3, C, D)
    b_stack = jnp.stack([bq * scale, bk, bv],
                        axis=0).astype(jnp.float32)[:, None, :]         # (3, 1, D)

    TQ = _pick_tile(Lq, tq_cap)
    out_shape = jax.ShapeDtypeStruct((N, Lq, D), jnp.float32)
    cparams = dict(vmem_limit_bytes=48 * 1024 * 1024)
    w_spec = pl.BlockSpec((3, C, D), lambda *a: (0, 0, 0))
    b_spec = pl.BlockSpec((3, 1, D), lambda *a: (0, 0, 0))

    if Lk <= single_pass_lk_cap:
        # ---- single-pass path: whole K/V length per step, no scratch ----
        BN = _pick_batch(N, max(1, 2048 // max(TQ, Lk)))
        grid = (N // BN, Lq // TQ)
        return pl.pallas_call(
            _attn_single_kernel,
            out_shape=out_shape,
            grid_spec=pltpu.PrefetchScalarGridSpec(
                num_scalar_prefetch=0,
                grid=grid,
                in_specs=[
                    pl.BlockSpec((BN, TQ, C), lambda b, q: (b, q, 0)),
                    pl.BlockSpec((BN, Lk, C), lambda b, q: (b, 0, 0)),
                    w_spec,
                    b_spec,
                ],
                out_specs=pl.BlockSpec((BN, TQ, D), lambda b, q: (b, q, 0)),
            ),
            compiler_params=pltpu.CompilerParams(
                dimension_semantics=("parallel", "parallel"), **cparams),
        )(xi, xo, w_stack, b_stack)

    # ---- flash path: online softmax over Lk tiles (reduction axis last) ----
    TK = _pick_tile(Lk, tk_cap)
    BN = _pick_batch(N, max(1, 2048 // max(TQ, TK)))
    grid = (N // BN, Lq // TQ, Lk // TK)
    return pl.pallas_call(
        _attn_flash_kernel,
        out_shape=out_shape,
        grid_spec=pltpu.PrefetchScalarGridSpec(
            num_scalar_prefetch=0,
            grid=grid,
            in_specs=[
                pl.BlockSpec((BN, TQ, C), lambda b, q, k: (b, q, 0)),
                pl.BlockSpec((BN, TK, C), lambda b, q, k: (b, k, 0)),
                w_spec,
                b_spec,
            ],
            out_specs=pl.BlockSpec((BN, TQ, D), lambda b, q, k: (b, q, 0)),
            scratch_shapes=[
                pltpu.VMEM((BN, TQ, 1), jnp.float32),   # m (running max)
                pltpu.VMEM((BN, TQ, 1), jnp.float32),   # l (running denom)
                pltpu.VMEM((BN, TQ, D), jnp.float32),   # acc (running numerator)
            ],
        ),
        compiler_params=pltpu.CompilerParams(
            dimension_semantics=("parallel", "parallel", "arbitrary"), **cparams),
    )(xi, xo, w_stack, b_stack)


# ----------------------------------------------------------------------------
# Pure-JAX reference (mirrors the PyTorch forward in f32)
# ----------------------------------------------------------------------------
def attention_ref(x_inner, x_outer, wq, bq, wk, bk, wv, bv, n_factor=None):
    if n_factor is None:
        n_factor = wq.shape[0]

    def conv1(x, w, b):  # x: (N, C, L), w: (D, C), b: (D,)
        return jnp.einsum('ncl,dc->ndl', x, w) + b[None, :, None]

    q = jnp.transpose(conv1(x_inner, wq, bq), (0, 2, 1))   # (N, Lq, D)
    k = jnp.transpose(conv1(x_outer, wk, bk), (0, 2, 1))   # (N, Lk, D)
    v = jnp.transpose(conv1(x_outer, wv, bv), (0, 2, 1))   # (N, Lk, D)
    res = jnp.einsum('nqd,nkd->nqk', q, k) / jnp.sqrt(jnp.float32(n_factor))
    attn = jax.nn.softmax(res, axis=2)
    return jnp.einsum('nql,nld->nqd', attn, v)


def _make_inputs(key, N, C, Lq, Lk, D):
    ks = jax.random.split(key, 8)
    x_inner = jax.random.normal(ks[0], (N, C, Lq), dtype=jnp.float32)
    x_outer = jax.random.normal(ks[1], (N, C, Lk), dtype=jnp.float32)
    scale = 1.0 / jnp.sqrt(jnp.float32(C))
    wq = jax.random.uniform(ks[2], (D, C), minval=-scale, maxval=scale)
    wk = jax.random.uniform(ks[3], (D, C), minval=-scale, maxval=scale)
    wv = jax.random.uniform(ks[4], (D, C), minval=-scale, maxval=scale)
    bq = jax.random.uniform(ks[5], (D,), minval=-scale, maxval=scale)
    bk = jax.random.uniform(ks[6], (D,), minval=-scale, maxval=scale)
    bv = jax.random.uniform(ks[7], (D,), minval=-scale, maxval=scale)
    return x_inner, x_outer, wq, bq, wk, bk, wv, bv


if __name__ == "__main__":
    key = jax.random.PRNGKey(0)
    k1, k2 = jax.random.split(key)

    # --- Test 1: module-consistent small shapes (single-pass path) ---------
    # batch=2, in_channels=4, seq=8, n_factor=32
    N, C, L, D = 2, 4, 8, 32
    args = _make_inputs(k1, N, C, L, L, D)
    out = jax.block_until_ready(attention_pallas(*args))
    ref = attention_ref(*args)
    assert out.shape == (N, L, D), out.shape
    # bf16 MXU inputs + approx reciprocal -> bf16-appropriate tolerance vs f32.
    assert jnp.allclose(out, ref, atol=4e-2, rtol=4e-2), \
        float(jnp.max(jnp.abs(out - ref)))

    # --- Test 2: small shapes but tiny tile caps to exercise the flash path
    N2, C2, Lq2, Lk2, D2 = 2, 4, 16, 32, 32
    args2 = _make_inputs(k2, N2, C2, Lq2, Lk2, D2)
    out2 = jax.block_until_ready(
        attention_pallas(*args2, tq_cap=8, tk_cap=8, single_pass_lk_cap=8))
    ref2 = attention_ref(*args2)
    assert out2.shape == (N2, Lq2, D2), out2.shape
    assert jnp.allclose(out2, ref2, atol=4e-2, rtol=4e-2), \
        float(jnp.max(jnp.abs(out2 - ref2)))

    print("KERNEL_OK")
</pallas_src>

<mosaic_0001>
module attributes {stable_mosaic.version = 11 : i64} {
  func.func @_attn_single_kernel(%arg0: i32, %arg1: i32, %arg2: memref<2x8x4xbf16, #tpu.memory_space<vmem>>, %arg3: memref<2x8x4xbf16, #tpu.memory_space<vmem>>, %arg4: memref<3x4x32xbf16, #tpu.memory_space<vmem>>, %arg5: memref<3x1x32xf32, #tpu.memory_space<vmem>>, %arg6: memref<2x8x32xf32, #tpu.memory_space<vmem>>) attributes {dimension_semantics = [#tpu.dimension_semantics<parallel>, #tpu.dimension_semantics<parallel>], iteration_bounds = array<i64: 1, 1>, scalar_prefetch = 0 : i64, scratch_operands = 0 : i64, tpu.core_type = #tpu.core_type<tc>, window_params = [{transform_indices = @transform_0, window_bounds = array<i64: 2, 8, 4>}, {transform_indices = @transform_1, window_bounds = array<i64: 2, 8, 4>}, {pipeline_mode = #tpu.pipeline_mode<synchronous>, transform_indices = @transform_2, window_bounds = array<i64: 3, 4, 32>}, {pipeline_mode = #tpu.pipeline_mode<synchronous>, transform_indices = @transform_3, window_bounds = array<i64: 3, 1, 32>}, {transform_indices = @transform_4, window_bounds = array<i64: 2, 8, 32>}]} {
    %c0 = arith.constant 0 : index
    %c0_0 = arith.constant 0 : index
    %c0_1 = arith.constant 0 : index
    %0 = vector.load %arg2[%c0, %c0_0, %c0_1] : memref<2x8x4xbf16, #tpu.memory_space<vmem>>, vector<2x8x4xbf16>
    %c0_2 = arith.constant 0 : index
    %c0_3 = arith.constant 0 : index
    %c0_4 = arith.constant 0 : index
    %1 = vector.load %arg3[%c0_2, %c0_3, %c0_4] : memref<2x8x4xbf16, #tpu.memory_space<vmem>>, vector<2x8x4xbf16>
    %c0_5 = arith.constant 0 : index
    %c0_6 = arith.constant 0 : index
    %c0_7 = arith.constant 0 : index
    %2 = vector.load %arg4[%c0_5, %c0_6, %c0_7] : memref<3x4x32xbf16, #tpu.memory_space<vmem>>, vector<1x4x32xbf16>
    %3 = vector.shape_cast %2 : vector<1x4x32xbf16> to vector<4x32xbf16>
    %4 = vector.shape_cast %3 : vector<4x32xbf16> to vector<1x4x32xbf16>
    %5 = vector.broadcast %4 : vector<1x4x32xbf16> to vector<2x4x32xbf16>
    %c1 = arith.constant 1 : index
    %c0_8 = arith.constant 0 : index
    %c0_9 = arith.constant 0 : index
    %6 = vector.load %arg4[%c1, %c0_8, %c0_9] : memref<3x4x32xbf16, #tpu.memory_space<vmem>>, vector<1x4x32xbf16>
    %7 = vector.shape_cast %6 : vector<1x4x32xbf16> to vector<4x32xbf16>
    %8 = vector.shape_cast %7 : vector<4x32xbf16> to vector<1x4x32xbf16>
    %9 = vector.broadcast %8 : vector<1x4x32xbf16> to vector<2x4x32xbf16>
    %c2 = arith.constant 2 : index
    %c0_10 = arith.constant 0 : index
    %c0_11 = arith.constant 0 : index
    %10 = vector.load %arg4[%c2, %c0_10, %c0_11] : memref<3x4x32xbf16, #tpu.memory_space<vmem>>, vector<1x4x32xbf16>
    %11 = vector.shape_cast %10 : vector<1x4x32xbf16> to vector<4x32xbf16>
    %12 = vector.shape_cast %11 : vector<4x32xbf16> to vector<1x4x32xbf16>
    %13 = vector.broadcast %12 : vector<1x4x32xbf16> to vector<2x4x32xbf16>
    "tpu.trace_start"() <{level = 10 : i32, message = "bqc,bcd->bqd"}> : () -> ()
    %cst = arith.constant dense<0.000000e+00> : vector<2x8x32xf32>
    %14 = tpu.matmul %0, %5, %cst {dimension_numbers = #tpu.dot_dimension_numbers<[2], [1], [1], [2], [0, 0, 0, 1, 1, 2], [0], [0]>} : vector<2x8x4xbf16>, vector<2x4x32xbf16>, vector<2x8x32xf32> -> vector<2x8x32xf32>
    "tpu.trace_stop"() : () -> ()
    %c0_12 = arith.constant 0 : index
    %c0_13 = arith.constant 0 : index
    %c0_14 = arith.constant 0 : index
    %15 = vector.load %arg5[%c0_12, %c0_13, %c0_14] : memref<3x1x32xf32, #tpu.memory_space<vmem>>, vector<1x1x32xf32>
    %16 = vector.shape_cast %15 : vector<1x1x32xf32> to vector<1x32xf32>
    %17 = vector.shape_cast %16 : vector<1x32xf32> to vector<1x1x32xf32>
    %18 = vector.broadcast %17 : vector<1x1x32xf32> to vector<2x8x32xf32>
    %19 = arith.addf %14, %18 : vector<2x8x32xf32>
    "tpu.trace_start"() <{level = 10 : i32, message = "bkc,bcd->bkd"}> : () -> ()
    %cst_15 = arith.constant dense<0.000000e+00> : vector<2x8x32xf32>
    %20 = tpu.matmul %1, %9, %cst_15 {dimension_numbers = #tpu.dot_dimension_numbers<[2], [1], [1], [2], [0, 0, 0, 1, 1, 2], [0], [0]>} : vector<2x8x4xbf16>, vector<2x4x32xbf16>, vector<2x8x32xf32> -> vector<2x8x32xf32>
    "tpu.trace_stop"() : () -> ()
    %c1_16 = arith.constant 1 : index
    %c0_17 = arith.constant 0 : index
    %c0_18 = arith.constant 0 : index
    %21 = vector.load %arg5[%c1_16, %c0_17, %c0_18] : memref<3x1x32xf32, #tpu.memory_space<vmem>>, vector<1x1x32xf32>
    %22 = vector.shape_cast %21 : vector<1x1x32xf32> to vector<1x32xf32>
    %23 = vector.shape_cast %22 : vector<1x32xf32> to vector<1x1x32xf32>
    %24 = vector.broadcast %23 : vector<1x1x32xf32> to vector<2x8x32xf32>
    %25 = arith.addf %20, %24 : vector<2x8x32xf32>
    "tpu.trace_start"() <{level = 10 : i32, message = "bkc,bcd->bkd"}> : () -> ()
    %cst_19 = arith.constant dense<0.000000e+00> : vector<2x8x32xf32>
    %26 = tpu.matmul %1, %13, %cst_19 {dimension_numbers = #tpu.dot_dimension_numbers<[2], [1], [1], [2], [0, 0, 0, 1, 1, 2], [0], [0]>} : vector<2x8x4xbf16>, vector<2x4x32xbf16>, vector<2x8x32xf32> -> vector<2x8x32xf32>
    "tpu.trace_stop"() : () -> ()
    %c2_20 = arith.constant 2 : index
    %c0_21 = arith.constant 0 : index
    %c0_22 = arith.constant 0 : index
    %27 = vector.load %arg5[%c2_20, %c0_21, %c0_22] : memref<3x1x32xf32, #tpu.memory_space<vmem>>, vector<1x1x32xf32>
    %28 = vector.shape_cast %27 : vector<1x1x32xf32> to vector<1x32xf32>
    %29 = vector.shape_cast %28 : vector<1x32xf32> to vector<1x1x32xf32>
    %30 = vector.broadcast %29 : vector<1x1x32xf32> to vector<2x8x32xf32>
    %31 = arith.addf %26, %30 : vector<2x8x32xf32>
    %32 = arith.truncf %19 : vector<2x8x32xf32> to vector<2x8x32xbf16>
    %33 = arith.truncf %25 : vector<2x8x32xf32> to vector<2x8x32xbf16>
    %34 = arith.truncf %31 : vector<2x8x32xf32> to vector<2x8x32xbf16>
    "tpu.trace_start"() <{level = 10 : i32, message = "bqd,bkd->bqk"}> : () -> ()
    %cst_23 = arith.constant dense<0.000000e+00> : vector<2x8x8xf32>
    %35 = tpu.matmul %32, %33, %cst_23 {dimension_numbers = #tpu.dot_dimension_numbers<[2], [2], [1], [1], [0, 0, 0, 1, 1, 1], [0], [0]>} : vector<2x8x32xbf16>, vector<2x8x32xbf16>, vector<2x8x8xf32> -> vector<2x8x8xf32>
    "tpu.trace_stop"() : () -> ()
    %cst_24 = arith.constant dense<0xFF800000> : vector<2x8xf32>
    %36 = vector.multi_reduction <maximumf>, %35, %cst_24 [2] : vector<2x8x8xf32> to vector<2x8xf32>
    %37 = vector.shape_cast %36 : vector<2x8xf32> to vector<2x8x1xf32>
    %38 = vector.broadcast %37 : vector<2x8x1xf32> to vector<2x8x8xf32>
    %39 = arith.subf %35, %38 : vector<2x8x8xf32>
    %40 = math.exp %39 : vector<2x8x8xf32>
    %cst_25 = arith.constant dense<0.000000e+00> : vector<2x8xf32>
    %41 = vector.multi_reduction <add>, %40, %cst_25 [2] : vector<2x8x8xf32> to vector<2x8xf32>
    %42 = vector.shape_cast %41 : vector<2x8xf32> to vector<2x8x1xf32>
    %43 = tpu.reciprocal %42 {approx = true} : vector<2x8x1xf32> -> vector<2x8x1xf32>
    %44 = vector.broadcast %43 : vector<2x8x1xf32> to vector<2x8x8xf32>
    %45 = arith.mulf %40, %44 : vector<2x8x8xf32>
    %46 = arith.truncf %45 : vector<2x8x8xf32> to vector<2x8x8xbf16>
    "tpu.trace_start"() <{level = 10 : i32, message = "bqk,bkd->bqd"}> : () -> ()
    %cst_26 = arith.constant dense<0.000000e+00> : vector<2x8x32xf32>
    %47 = tpu.matmul %46, %34, %cst_26 {dimension_numbers = #tpu.dot_dimension_numbers<[2], [1], [1], [2], [0, 0, 0, 1, 1, 2], [0], [0]>} : vector<2x8x8xbf16>, vector<2x8x32xbf16>, vector<2x8x32xf32> -> vector<2x8x32xf32>
    "tpu.trace_stop"() : () -> ()
    %c0_27 = arith.constant 0 : index
    %c0_28 = arith.constant 0 : index
    %c0_29 = arith.constant 0 : index
    %48 = vector.load %arg6[%c0_27, %c0_28, %c0_29] : memref<2x8x32xf32, #tpu.memory_space<vmem>>, vector<2x8x32xf32>
    tpu.vector_store %arg6[%c0_27, %c0_28, %c0_29], %47 {strides = array<i32>} : memref<2x8x32xf32, #tpu.memory_space<vmem>>, vector<2x8x32xf32>,
    return
  }
  func.func @transform_0(%arg0: i32, %arg1: i32) -> (i32, i32, i32) {
    %c0_i32 = arith.constant 0 : i32
    %c0_i32_0 = arith.constant 0 : i32
    return %arg0, %arg1, %c0_i32 : i32, i32, i32
  }
  func.func @transform_1(%arg0: i32, %arg1: i32) -> (i32, i32, i32) {
    %c0_i32 = arith.constant 0 : i32
    %c0_i32_0 = arith.constant 0 : i32
    %c0_i32_1 = arith.constant 0 : i32
    return %arg0, %c0_i32, %c0_i32_0 : i32, i32, i32
  }
  func.func @transform_2(%arg0: i32, %arg1: i32) -> (i32, i32, i32) {
    %c0_i32 = arith.constant 0 : i32
    %c0_i32_0 = arith.constant 0 : i32
    %c0_i32_1 = arith.constant 0 : i32
    %c0_i32_2 = arith.constant 0 : i32
    return %c0_i32, %c0_i32_0, %c0_i32_1 : i32, i32, i32
  }
  func.func @transform_3(%arg0: i32, %arg1: i32) -> (i32, i32, i32) {
    %c0_i32 = arith.constant 0 : i32
    %c0_i32_0 = arith.constant 0 : i32
    %c0_i32_1 = arith.constant 0 : i32
    %c0_i32_2 = arith.constant 0 : i32
    return %c0_i32, %c0_i32_0, %c0_i32_1 : i32, i32, i32
  }
  func.func @transform_4(%arg0: i32, %arg1: i32) -> (i32, i32, i32) {
    %c0_i32 = arith.constant 0 : i32
    %c0_i32_0 = arith.constant 0 : i32
    return %arg0, %arg1, %c0_i32 : i32, i32, i32
  }
}

</mosaic_0001>

<bundles_post_ra>
// kernel: tpu_custom_call.1
= control target key start
LH: loop header
LB: loop body
LE: loop exit
PB: predicated region body
PF: predicated region fallthrough
CT: control target
= control target key end

     0   :  { %vm39_vm0 = vcmask 1041408   ;;  %v681_v1 = vmov 0.0   ;;  %vm35_vm1 = vcmask 31744   ;;  %vm682_vm2 = vmmov 0   ;;  %s795_s0 = inlined_call_operand.vmem [shape: bf16[2,8,4], index: 0, kind: input, shape index: {}]   ;;  %s796_s1 = inlined_call_operand.vmem [shape: bf16[2,8,4], index: 1, kind: input, shape index: {}]   ;;  %s797_s2 = inlined_call_operand.vmem [shape: bf16[3,4,32], index: 2, kind: input, shape index: {}]   ;;  %s798_s3 = inlined_call_operand.vmem [shape: f32[3,1,32], index: 3, kind: input, shape index: {}]   ;;  %s799_s4 = inlined_call_operand.hbm [shape: f32[2,8,32], index: 4, kind: output, shape index: {}]  }
   0x1   :  { %v23_v0 = vld [vmem:[%s797_s2] sm:$0x3]  ;;  %586 = vmatprep.subr.bf16.mxu0 %v681_v1  ;;  %592 = vmatprep.subr.bf16.mxu1 %v681_v1  ;;  %v20_v4 = vld [vmem:[%s795_s0 + $0x4] sm:$0xf]  ;;  %v549_v5 = vld [vmem:[%s797_s2 + $0x2] sm:$0x3] }
   0x2   :  { %v41_v2 = vsel %vm39_vm0, %v23_v0, 0  ;;  %v19_v3 = vld [vmem:[%s795_s0] sm:$0xf]  ;;  %588 = vmatprep.mubr.msk.bf16.mxu0 %vm682_vm2, %v681_v1  ;;  %594 = vmatprep.mubr.msk.bf16.mxu1 %vm682_vm2, %v681_v1  ;;  %v138_v6 = vsel %vm39_vm0, %v549_v5, 0 }
   0x3   :  { %587 = vmatpush3.bf16.msra.mxu0 %v41_v2  ;;  %593 = vmatpush3.bf16.msra.mxu1 %v41_v2 }
   0x4   :  { %9 = vsyncpa [#allocation3], 0  ;;  %598 = vmatprep.subr.bf16.mxu0 %v681_v1  ;;  %604 = vmatprep.subr.bf16.mxu1 %v681_v1  ;;  %v21_v7 = vld [vmem:[%s796_s1] sm:$0xf]  ;;  %v22_v8 = vld [vmem:[%s796_s1 + $0x4] sm:$0xf] }
   0x5   :  { %v550_v9 = vld [vmem:[%s797_s2 + $0x4] sm:$0x3]  ;;  %v555_v19 = vld [vmem:[%s798_s3 + $0x1] ss:$0 sm:$0xff]  ;;  %vm320_vm3 = vcmask 261120   ;;  %vm441_vm4 = vcmask 1043456  }
   0x6   :  { %589 = vmatmul.mubr.msk.bf16.vlgmr.msra.gmra.mxu0 %vm35_vm1, %v19_v3  ;;  %595 = vmatmul.mubr.msk.bf16.vlgmr.msra.gmra.mxu1 %vm35_vm1, %v20_v4  ;;  %v232_v10 = vsel %vm39_vm0, %v550_v9, 0  ;;  %v551_v28 = vld [vmem:[%s798_s3] ss:$0 sm:$0xff]  ;;  %v559_v39 = vld [vmem:[%s798_s3 + $0x2] ss:$0 sm:$0xff]  ;;  %vm413_vm5 = vcmask 64512  }
   0x7   :  { %599 = vmatpush3.bf16.msra.mxu0 %v138_v6  ;;  %605 = vmatpush3.bf16.msra.mxu1 %v138_v6  ;;  %s683_s3 = smov [#allocation2]  }
   0x8   :  { %600 = vmatprep.mubr.msk.bf16.mxu0 %vm682_vm2, %v681_v1  ;;  %606 = vmatprep.mubr.msk.bf16.mxu1 %vm682_vm2, %v681_v1  ;;  %s538_s6 = sshll.u32 %s683_s3, 4  ;;  %s539_s6 = int_to_ptr.vmem [resolvable:$true] %s538_s6 }
   0x9   :  { %610 = vmatprep.subr.bf16.mxu0 %v681_v1  ;;  %616 = vmatprep.subr.bf16.mxu1 %v681_v1  ;;  %s659_s7 = scalar_lea.vmem %s539_s6, 256  ;;  %p664_p1 = scmp.lt.s32.totalorder %s539_s6, %s539_s6 }
   0xa   :  { %p660_p0 = scmp.ne.s32.totalorder %s539_s6, %s659_s7  ;;  %p665_p2 = scmp.lt.s32.totalorder %s659_s7, %s659_s7 }
   0xc   :  { %p666_p3 = por %p665_p2, %p664_p1 }
   0xe   :  { %601 = vmatmul.mubr.msk.bf16.vlgmr.msra.gmra.mxu0 %vm35_vm1, %v21_v7  ;;  %607 = vmatmul.mubr.msk.bf16.vlgmr.msra.gmra.mxu1 %vm35_vm1, %v22_v8  ;;  %p667_p4 = pnand %p666_p3, %p660_p0 }
   0xf   :  { %612 = vmatprep.mubr.msk.bf16.mxu0 %vm682_vm2, %v681_v1  ;;  %618 = vmatprep.mubr.msk.bf16.mxu1 %vm682_vm2, %v681_v1 }
  0x10   :  { %611 = vmatpush3.bf16.msra.mxu0 %v232_v10  ;;  %617 = vmatpush3.bf16.msra.mxu1 %v232_v10 }
  0x11   :  { %622 = vmatprep.subr.bf16.mxu0 %v681_v1  ;;  %628 = vmatprep.subr.bf16.mxu1 %v681_v1 }
  0x16   :  { %613 = vmatmul.mubr.msk.bf16.vlgmr.msra.gmra.mxu0 %vm35_vm1, %v21_v7  ;;  %619 = vmatmul.mubr.msk.bf16.vlgmr.msra.gmra.mxu1 %vm35_vm1, %v22_v8 }
  0x17   :  { %624 = vmatprep.mubr.msk.bf16.mxu0 %vm682_vm2, %v681_v1  ;;  %630 = vmatprep.mubr.msk.bf16.mxu1 %vm682_vm2, %v681_v1 }
  0xc6   :  { %v77_v11 = vpop.f32.mrf.mxu0  ;;  %v120_v12 = vpop.f32.mrf.mxu1 }
  0xc7   :  { %v78_v35 = vadd.f32 %v551_v28, %v77_v11  ;;  %v121_v36 = vadd.f32 %v551_v28, %v120_v12 }
  0xc8   :  { %v590_v13 = vpop.f32.mrf.mxu0  ;;  %v596_v14 = vpop.f32.mrf.mxu1 }
  0xc9   :  { %v314_v37 = vpack.c.bf16 %v78_v35, %v78_v35  ;;  %v315_v38 = vpack.c.bf16 %v121_v36, %v121_v36 }
  0xca   :  { %v80_v15 = vpop.f32.mrf.mxu0  ;;  %v123_v16 = vpop.f32.mrf.mxu1 }
  0xcc   :  { %v591_v17 = vpop.f32.mrf.mxu0  ;;  %v597_v18 = vpop.f32.mrf.mxu1 }
  0xce   :  { %v174_v20 = vpop.f32.mrf.mxu0  ;;  %v217_v21 = vpop.f32.mrf.mxu1 }
  0xcf   :  { %v175_v22 = vadd.f32 %v555_v19, %v174_v20  ;;  %v218_v23 = vadd.f32 %v555_v19, %v217_v21 }
  0xd0   :  { %v602_v24 = vpop.f32.mrf.mxu0  ;;  %v608_v25 = vpop.f32.mrf.mxu1 }
  0xd1   :  { %v316_v26 = vpack.c.bf16 %v175_v22, %v175_v22  ;;  %v317_v27 = vpack.c.bf16 %v218_v23, %v218_v23 }
  0xd2   :  { %v177_v29 = vpop.f32.mrf.mxu0  ;;  %v220_v30 = vpop.f32.mrf.mxu1 }
  0xd3   :  { %v325_v31 = vsel %vm320_vm3, %v316_v26, 0  ;;  %v371_v32 = vsel %vm320_vm3, %v317_v27, 0 }
  0xd4   :  { %v603_v33 = vpop.f32.mrf.mxu0  ;;  %v609_v34 = vpop.f32.mrf.mxu1  ;;  %623 = vmatpush3.bf16.xpose.msra.mxu0 %v325_v31  ;;  %629 = vmatpush3.bf16.xpose.msra.mxu1 %v371_v32 }
  0xd5   :  { %634 = vmatprep.subr.bf16.mxu0 %v681_v1  ;;  %640 = vmatprep.subr.bf16.mxu1 %v681_v1 }
  0xd6   :  { %v268_v40 = vpop.f32.mrf.mxu0  ;;  %v308_v41 = vpop.f32.mrf.mxu1 }
  0xd7   :  { %v269_v42 = vadd.f32 %v559_v39, %v268_v40  ;;  %v309_v43 = vadd.f32 %v559_v39, %v308_v41 }
  0xd8   :  { %v614_v44 = vpop.f32.mrf.mxu0  ;;  %v620_v45 = vpop.f32.mrf.mxu1 }
  0xd9   :  { %v318_v46 = vpack.c.bf16 %v269_v42, %v269_v42  ;;  %v319_v47 = vpack.c.bf16 %v309_v43, %v309_v43 }
  0xda   :  { %v271_v48 = vpop.f32.mrf.mxu0  ;;  %v311_v49 = vpop.f32.mrf.mxu1 }
  0xdb   :  { %625 = vmatmul.mubr.msk.bf16.vlgmr.msra.gmra.mxu0 %vm320_vm3, %v314_v37  ;;  %631 = vmatmul.mubr.msk.bf16.vlgmr.msra.gmra.mxu1 %vm320_vm3, %v315_v38  ;;  %v443_v50 = vsel %vm441_vm4, %v318_v46, 0  ;;  %v489_v51 = vsel %vm441_vm4, %v319_v47, 0 }
  0xdc   :  { %636 = vmatprep.mubr.msk.bf16.mxu0 %vm682_vm2, %v681_v1  ;;  %642 = vmatprep.mubr.msk.bf16.mxu1 %vm682_vm2, %v681_v1  ;;  %v615_v52 = vpop.f32.mrf.mxu0  ;;  %v621_v53 = vpop.f32.mrf.mxu1 }
  0xdd   :  { %635 = vmatpush3.bf16.msra.mxu0 %v443_v50  ;;  %641 = vmatpush3.bf16.msra.mxu1 %v489_v51 }
 0x19b   :  { %v361_v54 = vpop.f32.mrf.mxu0  ;;  %v407_v55 = vpop.f32.mrf.mxu1 }
 0x19c   :  { %v414_v56 = vsel %vm413_vm5, %v361_v54, -inf  ;;  %v417_v61 = vsel %vm413_vm5, %v407_v55, -inf }
 0x19d   :  { %v632_v57 = vpop.f32.mrf.mxu1  ;;  %415 = vmax.xlane.f32.xlu0 %v414_v56  ;;  %v626_v58 = vpop.f32.mrf.mxu0 }
 0x19f   :  { %v364_v59 = vpop.f32.mrf.mxu0  ;;  %v410_v60 = vpop.f32.mrf.mxu1 }
 0x1a1   :  { %v633_v62 = vpop.f32.mrf.mxu1  ;;  %418 = vmax.xlane.f32.xlu0 %v417_v61  ;;  %v627_v63 = vpop.f32.mrf.mxu0 }
 0x226   :  { %v416_v0 = vpop.xlane.xlu0 %415 }
 0x227   :  { %v420_v1 = vsub.f32 %v361_v54, %v416_v0 }
 0x229   :  { %v422_v2 = vmul.f32 1.442695, %v420_v1 }
 0x22a   :  { %v419_v3 = vpop.xlane.xlu0 %418 }
 0x22b   :  { %651 = vpow2.f32 %v422_v2  ;;  %v421_v4 = vsub.f32 %v407_v55, %v419_v3 }
 0x22d   :  { %v424_v5 = vmul.f32 1.442695, %v421_v4 }
 0x22f   :  { %653 = vpow2.f32 %v424_v5 }
 0x238   :  { %v652_v6 = vpop.eup %651 }
 0x239   :  { %v426_v7 = vsel %vm413_vm5, %v652_v6, 0.0 }
 0x23a   :  { %427 = vadd.xlane.f32.xlu1 %v426_v7 }
 0x23c   :  { %v654_v8 = vpop.eup %653 }
 0x23d   :  { %v429_v9 = vsel %vm413_vm5, %v654_v8, 0.0 }
 0x23e   :  { %430 = vadd.xlane.f32.xlu1 %v429_v9 }
 0x2c3   :  { %v428_v10 = vpop.xlane.xlu1 %427 }
 0x2c4   :  { %655 = vrcp.f32 %v428_v10 }
 0x2c7   :  { %v431_v11 = vpop.xlane.xlu1 %430 }
 0x2c8   :  { %657 = vrcp.f32 %v431_v11 }
 0x2d1   :  { %v656_v12 = vpop.eup %655 }
 0x2d2   :  { %v434_v13 = vmul.f32 %v656_v12, %v652_v6 }
 0x2d4   :  { %v436_v14 = vpack.c.bf16 %v434_v13, %v434_v13 }
 0x2d5   :  { %v658_v15 = vpop.eup %657 }
 0x2d6   :  { %637 = vmatmul.mubr.msk.bf16.vlgmr.msra.gmra.mxu0 %vm413_vm5, %v436_v14  ;;  %v435_v16 = vmul.f32 %v658_v15, %v654_v8 }
 0x2d8   :  { %v437_v17 = vpack.c.bf16 %v435_v16, %v435_v16 }
 0x2da   :  { %643 = vmatmul.mubr.msk.bf16.vlgmr.msra.gmra.mxu1 %vm413_vm5, %v437_v17 }
 0x396   :  { %v479_v18 = vpop.f32.mrf.mxu0 }
 0x397   :  { %531 = vst.msk [vmem:[#allocation2] sm:$0xff] %vm320_vm3, %v479_v18 }
 0x398   :  { %v638_v19 = vpop.f32.mrf.mxu0 }
 0x39a   :  { %v482_v20 = vpop.f32.mrf.mxu0  ;;  %v525_v21 = vpop.f32.mrf.mxu1 }
 0x39b   :  { %532 = vst.msk [vmem:[#allocation2 + $0x8] sm:$0xff] %vm320_vm3, %v525_v21 }
 0x39c   :  { %v639_v22 = vpop.f32.mrf.mxu0  ;;  %v644_v23 = vpop.f32.mrf.mxu1 }
 0x39d   :  { %670 = shalt.err (!%p667_p4)
}
 0x39e   :  { %s684_s8 = smov 128   ;;  %s685_s9 = smov 8   ;;  %v528_v24 = vpop.f32.mrf.mxu1 }
 0x39f   :  { %544 = dma.vmem_to_hbm [thread:$0]  %s539_s6, 256, %s799_s4, [#allocation3], %s684_s8, %s684_s8, %s685_s9  }
 0x3a0   :  { %v645_v25 = vpop.f32.mrf.mxu1 }
 0x3a1   :  { %679 = dma.done.wait [#allocation3], 256  }
 0x3a2   :  { %680 = vsyncadd [#allocation3], 4294967040 }
 0x3a3   :  { %548 = vsyncpa [#allocation3], 1 }

</bundles_post_ra>
